<compile_context>
chip_gen: v5e
topology: v5e:2x2
jax: 0.10.0
libtpu: 0.0.40
codegen_flags: <defaults>
</compile_context>

<pallas_src>
import functools

import jax
import jax.numpy as jnp
from jax.experimental import pallas as pl
from jax.experimental.pallas import tpu as pltpu


def _cross_attn_kernel(x_ref, k_ref, v_ref,
                       wq_ref, wk_ref, wv_ref, wp_ref, bp_ref,
                       o_ref, acc_ref, *cache_refs,
                       scale, heads_per_group, head_dim, cache_kv,
                       approx_reciprocal):
    # x_ref:  (1, tq, D)      current query tile of the current batch element
    # k_ref:  (1, Nk, D)      full key sequence of the current batch element
    # v_ref:  (1, Nv, D)
    # wq/wk/wv_ref: (Ghd, D)  per-head-group projection weights, torch (out,in)
    # wp_ref: (D_out, Ghd)    per-head-group slice of the output projection
    # bp_ref: (1, D_out)
    # o_ref:  (1, tq, D_out)
    # acc_ref: (tq, D_out) fp32 accumulator, resident across the group axis
    # cache_refs (only when cache_kv): kc/vc VMEM (n_groups, Nk, Ghd) in cdt
    nq = pl.program_id(1)
    g = pl.program_id(2)

    @pl.when(g == 0)
    def _init():
        acc_ref[...] = jnp.zeros_like(acc_ref)

    x = x_ref[0]                       # (tq, D)
    cdt = x.dtype                      # native MXU compute dtype (bf16 stays bf16)

    def project(inp, w_ref):
        # (rows, D) x (Ghd, D) contracted over D -> (rows, Ghd); fp32 accumulate.
        return jax.lax.dot_general(inp, w_ref[...],
                                   dimension_numbers=(((1,), (1,)), ((), ())),
                                   preferred_element_type=jnp.float32)

    # Query projection for G heads at once; fold the softmax scale in while the
    # result is still fp32 (scales (tq, Ghd), not the (tq, Nk) score matrix).
    q = (project(x, wq_ref) * scale).astype(cdt)                     # (tq, Ghd)

    if cache_kv:
        kc_ref, vc_ref = cache_refs

        # Project + cache K/V for this (batch, head-group) only on the first
        # query tile; later query tiles re-use the cached projections.
        @pl.when(nq == 0)
        def _fill_cache():
            kc_ref[g] = project(k_ref[0], wk_ref).astype(cdt)        # (Nk, Ghd)
            vc_ref[g] = project(v_ref[0], wv_ref).astype(cdt)

        kh = kc_ref[g]                                               # (Nk, Ghd)
        vh = vc_ref[g]
    else:
        kh = project(k_ref[0], wk_ref).astype(cdt)
        vh = project(v_ref[0], wv_ref).astype(cdt)

    # Per-head attention within the group (softmax must be per head).
    ctx_parts = []
    for j in range(heads_per_group):
        lo = j * head_dim
        qj = q[:, lo:lo + head_dim]
        kj = kh[:, lo:lo + head_dim]
        vj = vh[:, lo:lo + head_dim]
        # Scores: contract trailing dims of qj and kj (no kj.T relayout).
        s = jax.lax.dot_general(qj, kj,
                                dimension_numbers=(((1,), (1,)), ((), ())),
                                preferred_element_type=jnp.float32)  # (tq, Nk)
        # Softmax in fp32; divide via EUP approximate reciprocal (optional).
        s = s - jnp.max(s, axis=-1, keepdims=True)
        p = jnp.exp(s)
        denom = jnp.sum(p, axis=-1, keepdims=True)
        if approx_reciprocal:
            p = p * pl.reciprocal(denom, approx=True)
        else:
            p = p / denom
        ctx_parts.append(jnp.dot(p.astype(cdt), vj,
                                 preferred_element_type=jnp.float32).astype(cdt))
    ctx = ctx_parts[0] if heads_per_group == 1 else jnp.concatenate(ctx_parts, axis=-1)

    # (tq, Ghd) x (D_out, Ghd) contracted over the group width -> (tq, D_out).
    acc_ref[...] += jax.lax.dot_general(ctx, wp_ref[...],
                                        dimension_numbers=(((1,), (1,)), ((), ())),
                                        preferred_element_type=jnp.float32)

    @pl.when(g == pl.num_programs(2) - 1)
    def _finalize():
        out = acc_ref[...] + bp_ref[...].astype(jnp.float32)
        o_ref[0] = out.astype(o_ref.dtype)


def _default_vmem_limit():
    # ~48 MiB on v7x (64 MiB physical), up to ~96 MiB on v5e/v6e (128 MiB
    # physical).  Conservative fallback if the hardware query is unavailable.
    try:
        cap = pltpu.get_tpu_info().vmem_capacity_bytes
        return min(int(cap) * 3 // 4, 100 * 1024 * 1024)
    except Exception:
        return 48 * 1024 * 1024


def cross_attention_pallas(x, k, v, wq, wk, wv, wp, bp, *,
                           num_heads, scale,
                           q_tile=256, head_group_width=256,
                           cache_kv=None, kv_single_buffer=False,
                           approx_reciprocal=True, vmem_limit_bytes=None):
    """x:(B,N,D) k:(B,Nk,D) v:(B,Nv,D); wq/wk/wv:(all_head_dim, D) torch (out,in)
    layout; wp:(D_out, all_head_dim) torch layout; bp:(D_out,).

    Tuning: q_tile=512 on v6e (128 MiB VMEM), 256 on v7x, 128 on v5e;
    head_group_width=256 on v6e/v7x, 128 on v5e."""
    B, N, D = x.shape
    _, Nk, _ = k.shape
    _, Nv, _ = v.shape
    assert Nk == Nv, "k and v must have the same sequence length"
    assert D % num_heads == 0
    hd = D // num_heads
    all_head_dim = wq.shape[0]
    assert all_head_dim == num_heads * hd
    D_out = wp.shape[0]

    # --- head grouping: G heads per grid step so MXU tiles are ~group_width wide.
    target = max(head_group_width, hd)
    G = 1
    for cand in range(num_heads, 0, -1):
        if num_heads % cand == 0 and cand * hd <= target:
            G = cand
            break
    # (G*hd, D) weight blocks need a sublane dim that is a multiple of 8 or the
    # full all_head_dim; fall back to a single big group otherwise.
    if (G * hd) % 8 != 0 and G != num_heads:
        G = num_heads
    n_groups = num_heads // G
    Ghd = G * hd

    # --- query-row tiling: full-N block for short sequences, otherwise a
    # multiple-of-8 tile with a cdiv grid (masked tail block for ragged N).
    if q_tile < N:
        q_tile = max(8, (q_tile // 8) * 8)
        if q_tile >= N:
            q_tile = N
    else:
        q_tile = N
    n_q = pl.cdiv(N, q_tile)

    if cache_kv is None:
        cache_kv = n_q > 1            # caching only pays off across query tiles
    if vmem_limit_bytes is None:
        vmem_limit_bytes = _default_vmem_limit()

    bp_2d = bp.reshape(1, D_out)
    cdt = x.dtype

    kernel = functools.partial(_cross_attn_kernel, scale=scale,
                               heads_per_group=G, head_dim=hd,
                               cache_kv=cache_kv,
                               approx_reciprocal=approx_reciprocal)

    # Optional v7x knob: single-buffer the (constant-index) raw K/V blocks to
    # free VMEM headroom for the projected-K/V cache / bigger q_tile.
    kv_spec_kwargs = {}
    if kv_single_buffer:
        kv_spec_kwargs["pipeline_mode"] = pl.Buffered(1)

    scratch_shapes = [pltpu.VMEM((q_tile, D_out), jnp.float32)]
    if cache_kv:
        scratch_shapes += [pltpu.VMEM((n_groups, Nk, Ghd), cdt),
                           pltpu.VMEM((n_groups, Nv, Ghd), cdt)]

    # When the projected-K/V cache is active, the query-tile axis must not be
    # split across cores (private scratch), so it is marked "arbitrary".
    dim_sem = ("parallel", "arbitrary" if cache_kv else "parallel", "arbitrary")

    def nbytes(a):
        return int(a.size) * a.dtype.itemsize

    itemsize = x.dtype.itemsize
    flops = 2 * B * (N * D * all_head_dim            # q projection
                     + 2 * Nk * D * all_head_dim     # k/v projection (once per b)
                     + 2 * N * Nk * all_head_dim     # scores + PV
                     + N * all_head_dim * D_out)     # output projection
    cost = pl.CostEstimate(
        flops=flops,
        transcendentals=B * num_heads * N * Nk,
        bytes_accessed=(nbytes(x) + nbytes(k) + nbytes(v)
                        + B * n_q * (nbytes(wq) + nbytes(wk) + nbytes(wv) + nbytes(wp))
                        + nbytes(bp_2d)
                        + B * N * D_out * itemsize),
    )

    return pl.pallas_call(
        kernel,
        out_shape=jax.ShapeDtypeStruct((B, N, D_out), x.dtype),
        grid_spec=pltpu.PrefetchScalarGridSpec(
            num_scalar_prefetch=0,
            grid=(B, n_q, n_groups),                  # reduction (group) axis last
            in_specs=[
                pl.BlockSpec((1, q_tile, D), lambda b, nq, g: (b, nq, 0)),
                pl.BlockSpec((1, Nk, D), lambda b, nq, g: (b, 0, 0), **kv_spec_kwargs),
                pl.BlockSpec((1, Nv, D), lambda b, nq, g: (b, 0, 0), **kv_spec_kwargs),
                pl.BlockSpec((Ghd, D), lambda b, nq, g: (g, 0)),       # wq (torch layout)
                pl.BlockSpec((Ghd, D), lambda b, nq, g: (g, 0)),       # wk
                pl.BlockSpec((Ghd, D), lambda b, nq, g: (g, 0)),       # wv
                pl.BlockSpec((D_out, Ghd), lambda b, nq, g: (0, g)),   # wp (torch layout)
                pl.BlockSpec((1, D_out), lambda b, nq, g: (0, 0)),
            ],
            out_specs=pl.BlockSpec((1, q_tile, D_out), lambda b, nq, g: (b, nq, 0)),
            scratch_shapes=scratch_shapes),
        compiler_params=pltpu.CompilerParams(
            dimension_semantics=dim_sem,
            vmem_limit_bytes=vmem_limit_bytes),
        cost_estimate=cost,
    )(x, k, v, wq, wk, wv, wp, bp_2d)


def cross_attention_ref(x, k, v, wq, wk, wv, wp, bp, *, num_heads, scale):
    """Pure-JAX reference mirroring the PyTorch forward exactly."""
    B, N, D = x.shape
    Nk = k.shape[1]
    Nv = v.shape[1]
    hd = D // num_heads
    q = jnp.einsum('bnd,ed->bne', x, wq)                       # linear, no bias
    kk = jnp.einsum('bnd,ed->bne', k, wk)
    vv = jnp.einsum('bnd,ed->bne', v, wv)
    q = q.reshape(B, N, num_heads, hd).transpose(0, 2, 1, 3) * scale
    kk = kk.reshape(B, Nk, num_heads, hd).transpose(0, 2, 1, 3)
    vv = vv.reshape(B, Nv, num_heads, hd).transpose(0, 2, 1, 3)
    attn = jnp.einsum('bhnd,bhmd->bhnm', q, kk)
    attn = jax.nn.softmax(attn, axis=-1)
    out = jnp.einsum('bhnm,bhmd->bhnd', attn, vv)
    out = out.transpose(0, 2, 1, 3).reshape(B, N, D)
    return jnp.einsum('bnd,ed->bne', out, wp) + bp


if __name__ == "__main__":
    def run_case(name, B, N, Nk, dim, num_heads, out_dim=None, q_tile=256):
        out_dim = dim if out_dim is None else out_dim
        hd = dim // num_heads
        scale = hd ** -0.5

        key = jax.random.PRNGKey(0)
        kx, kk_, kv_, kwq, kwk, kwv, kwp, kbp = jax.random.split(key, 8)
        x = jax.random.normal(kx, (B, N, dim), dtype=jnp.float32)
        k = jax.random.normal(kk_, (B, Nk, dim), dtype=jnp.float32)
        v = jax.random.normal(kv_, (B, Nk, dim), dtype=jnp.float32)
        # torch nn.Linear weight layout: (out_features, in_features).
        wq = jax.random.normal(kwq, (dim, dim), dtype=jnp.float32) * 0.05
        wk = jax.random.normal(kwk, (dim, dim), dtype=jnp.float32) * 0.05
        wv = jax.random.normal(kwv, (dim, dim), dtype=jnp.float32) * 0.05
        wp = jax.random.normal(kwp, (out_dim, dim), dtype=jnp.float32) * 0.05
        bp = jax.random.normal(kbp, (out_dim,), dtype=jnp.float32) * 0.05

        out = jax.block_until_ready(cross_attention_pallas(
            x, k, v, wq, wk, wv, wp, bp,
            num_heads=num_heads, scale=scale, q_tile=q_tile))
        ref = cross_attention_ref(x, k, v, wq, wk, wv, wp, bp,
                                  num_heads=num_heads, scale=scale)
        assert out.shape == (B, N, out_dim), f"{name}: bad output shape"
        # 1e-3 leaves headroom for the EUP approximate reciprocal (~1e-4 rel).
        assert jnp.allclose(out, ref, atol=1e-3, rtol=1e-3), f"{name}: mismatch"

    # 1) Generic cross-attention: single query tile, one 4-head group.
    run_case("base", B=2, N=8, Nk=12, dim=32, num_heads=4)
    # 2) Ragged query length with explicit tiling: exercises the cdiv grid,
    #    the masked tail block and the projected-K/V cache across query tiles.
    run_case("ragged_tiled", B=1, N=20, Nk=16, dim=32, num_heads=4, q_tile=8)
    # 3) Attention-pooling shape (N == 1 query), as used by AttentionPoolingBlock.
    run_case("attn_pool", B=2, N=1, Nk=16, dim=32, num_heads=4)

    print("KERNEL_OK")
</pallas_src>

<mosaic_0001>
module attributes {stable_mosaic.version = 11 : i64} {
  func.func @_cross_attn_kernel(%arg0: i32, %arg1: i32, %arg2: i32, %arg3: memref<1x8x32xf32, #tpu.memory_space<vmem>>, %arg4: memref<1x12x32xf32, #tpu.memory_space<vmem>>, %arg5: memref<1x12x32xf32, #tpu.memory_space<vmem>>, %arg6: memref<32x32xf32, #tpu.memory_space<vmem>>, %arg7: memref<32x32xf32, #tpu.memory_space<vmem>>, %arg8: memref<32x32xf32, #tpu.memory_space<vmem>>, %arg9: memref<32x32xf32, #tpu.memory_space<vmem>>, %arg10: memref<1x32xf32, #tpu.memory_space<vmem>>, %arg11: memref<1x8x32xf32, #tpu.memory_space<vmem>>, %arg12: memref<8x32xf32, #tpu.memory_space<vmem>>) attributes {dimension_semantics = [#tpu.dimension_semantics<parallel>, #tpu.dimension_semantics<parallel>, #tpu.dimension_semantics<arbitrary>], iteration_bounds = array<i64: 2, 1, 1>, scalar_prefetch = 0 : i64, scratch_operands = 1 : i64, tpu.core_type = #tpu.core_type<tc>, window_params = [{transform_indices = @transform_0, window_bounds = array<i64: 1, 8, 32>}, {transform_indices = @transform_1, window_bounds = array<i64: 1, 12, 32>}, {transform_indices = @transform_2, window_bounds = array<i64: 1, 12, 32>}, {transform_indices = @transform_3, window_bounds = array<i64: 32, 32>}, {transform_indices = @transform_4, window_bounds = array<i64: 32, 32>}, {transform_indices = @transform_5, window_bounds = array<i64: 32, 32>}, {transform_indices = @transform_6, window_bounds = array<i64: 32, 32>}, {pipeline_mode = #tpu.pipeline_mode<synchronous>, transform_indices = @transform_7, window_bounds = array<i64: 1, 32>}, {transform_indices = @transform_8, window_bounds = array<i64: 1, 8, 32>}]} {
    %c0_i32 = arith.constant 0 : i32
    %0 = arith.cmpi eq, %arg2, %c0_i32 : i32
    %1 = arith.extui %0 : i1 to i32
    %c0_i32_0 = arith.constant 0 : i32
    %2 = arith.cmpi ne, %1, %c0_i32_0 : i32
    scf.if %2 {
      %cst_43 = arith.constant 0.000000e+00 : f32
      %86 = vector.broadcast %cst_43 : f32 to vector<8x32xf32>
      %c0_44 = arith.constant 0 : index
      %c0_45 = arith.constant 0 : index
      %87 = vector.load %arg12[%c0_44, %c0_45] : memref<8x32xf32, #tpu.memory_space<vmem>>, vector<8x32xf32>
      tpu.vector_store %arg12[%c0_44, %c0_45], %86 {strides = array<i32>} : memref<8x32xf32, #tpu.memory_space<vmem>>, vector<8x32xf32>,
    } else {
    }
    %c0 = arith.constant 0 : index
    %c0_1 = arith.constant 0 : index
    %c0_2 = arith.constant 0 : index
    %3 = vector.load %arg3[%c0, %c0_1, %c0_2] : memref<1x8x32xf32, #tpu.memory_space<vmem>>, vector<1x8x32xf32>
    %4 = vector.shape_cast %3 : vector<1x8x32xf32> to vector<8x32xf32>
    %c0_3 = arith.constant 0 : index
    %c0_4 = arith.constant 0 : index
    %5 = vector.load %arg6[%c0_3, %c0_4] : memref<32x32xf32, #tpu.memory_space<vmem>>, vector<32x32xf32>
    %cst = arith.constant dense<0.000000e+00> : vector<8x32xf32>
    %6 = tpu.matmul %4, %5, %cst {dimension_numbers = #tpu.dot_dimension_numbers<[1], [1], [0], [0], [0, 0, 1, 0], [], []>} : vector<8x32xf32>, vector<32x32xf32>, vector<8x32xf32> -> vector<8x32xf32>
    %cst_5 = arith.constant 0.353553385 : f32
    %7 = vector.broadcast %cst_5 : f32 to vector<8x32xf32>
    %8 = arith.mulf %6, %7 : vector<8x32xf32>
    %c0_6 = arith.constant 0 : index
    %c0_7 = arith.constant 0 : index
    %c0_8 = arith.constant 0 : index
    %9 = vector.load %arg4[%c0_6, %c0_7, %c0_8] : memref<1x12x32xf32, #tpu.memory_space<vmem>>, vector<1x12x32xf32>
    %10 = vector.shape_cast %9 : vector<1x12x32xf32> to vector<12x32xf32>
    %c0_9 = arith.constant 0 : index
    %c0_10 = arith.constant 0 : index
    %11 = vector.load %arg7[%c0_9, %c0_10] : memref<32x32xf32, #tpu.memory_space<vmem>>, vector<32x32xf32>
    %cst_11 = arith.constant dense<0.000000e+00> : vector<12x32xf32>
    %12 = tpu.matmul %10, %11, %cst_11 {dimension_numbers = #tpu.dot_dimension_numbers<[1], [1], [0], [0], [0, 0, 1, 0], [], []>} : vector<12x32xf32>, vector<32x32xf32>, vector<12x32xf32> -> vector<12x32xf32>
    %c0_12 = arith.constant 0 : index
    %c0_13 = arith.constant 0 : index
    %c0_14 = arith.constant 0 : index
    %13 = vector.load %arg5[%c0_12, %c0_13, %c0_14] : memref<1x12x32xf32, #tpu.memory_space<vmem>>, vector<1x12x32xf32>
    %14 = vector.shape_cast %13 : vector<1x12x32xf32> to vector<12x32xf32>
    %c0_15 = arith.constant 0 : index
    %c0_16 = arith.constant 0 : index
    %15 = vector.load %arg8[%c0_15, %c0_16] : memref<32x32xf32, #tpu.memory_space<vmem>>, vector<32x32xf32>
    %cst_17 = arith.constant dense<0.000000e+00> : vector<12x32xf32>
    %16 = tpu.matmul %14, %15, %cst_17 {dimension_numbers = #tpu.dot_dimension_numbers<[1], [1], [0], [0], [0, 0, 1, 0], [], []>} : vector<12x32xf32>, vector<32x32xf32>, vector<12x32xf32> -> vector<12x32xf32>
    %17 = vector.extract_strided_slice %8 {offsets = [0, 0], sizes = [8, 8], strides = [1, 1]} : vector<8x32xf32> to vector<8x8xf32>
    %18 = vector.extract_strided_slice %12 {offsets = [0, 0], sizes = [12, 8], strides = [1, 1]} : vector<12x32xf32> to vector<12x8xf32>
    %19 = vector.extract_strided_slice %16 {offsets = [0, 0], sizes = [12, 8], strides = [1, 1]} : vector<12x32xf32> to vector<12x8xf32>
    %cst_18 = arith.constant dense<0.000000e+00> : vector<8x12xf32>
    %20 = tpu.matmul %17, %18, %cst_18 {dimension_numbers = #tpu.dot_dimension_numbers<[1], [1], [0], [0], [0, 0, 1, 0], [], []>} : vector<8x8xf32>, vector<12x8xf32>, vector<8x12xf32> -> vector<8x12xf32>
    %cst_19 = arith.constant dense<0xFF800000> : vector<8xf32>
    %21 = vector.multi_reduction <maximumf>, %20, %cst_19 [1] : vector<8x12xf32> to vector<8xf32>
    %22 = vector.shape_cast %21 : vector<8xf32> to vector<8x1xf32>
    %23 = vector.broadcast %22 : vector<8x1xf32> to vector<8x12xf32>
    %24 = arith.subf %20, %23 : vector<8x12xf32>
    %25 = math.exp %24 : vector<8x12xf32>
    %cst_20 = arith.constant dense<0.000000e+00> : vector<8xf32>
    %26 = vector.multi_reduction <add>, %25, %cst_20 [1] : vector<8x12xf32> to vector<8xf32>
    %27 = vector.shape_cast %26 : vector<8xf32> to vector<8x1xf32>
    %28 = tpu.reciprocal %27 {approx = true} : vector<8x1xf32> -> vector<8x1xf32>
    %29 = vector.broadcast %28 : vector<8x1xf32> to vector<8x12xf32>
    %30 = arith.mulf %25, %29 : vector<8x12xf32>
    %cst_21 = arith.constant dense<0.000000e+00> : vector<8x8xf32>
    %31 = tpu.matmul %30, %19, %cst_21 {dimension_numbers = #tpu.dot_dimension_numbers<[1], [0], [0], [1], [0, 0, 1, 1], [], []>} : vector<8x12xf32>, vector<12x8xf32>, vector<8x8xf32> -> vector<8x8xf32>
    %32 = vector.extract_strided_slice %8 {offsets = [0, 8], sizes = [8, 8], strides = [1, 1]} : vector<8x32xf32> to vector<8x8xf32>
    %33 = vector.extract_strided_slice %12 {offsets = [0, 8], sizes = [12, 8], strides = [1, 1]} : vector<12x32xf32> to vector<12x8xf32>
    %34 = vector.extract_strided_slice %16 {offsets = [0, 8], sizes = [12, 8], strides = [1, 1]} : vector<12x32xf32> to vector<12x8xf32>
    %cst_22 = arith.constant dense<0.000000e+00> : vector<8x12xf32>
    %35 = tpu.matmul %32, %33, %cst_22 {dimension_numbers = #tpu.dot_dimension_numbers<[1], [1], [0], [0], [0, 0, 1, 0], [], []>} : vector<8x8xf32>, vector<12x8xf32>, vector<8x12xf32> -> vector<8x12xf32>
    %cst_23 = arith.constant dense<0xFF800000> : vector<8xf32>
    %36 = vector.multi_reduction <maximumf>, %35, %cst_23 [1] : vector<8x12xf32> to vector<8xf32>
    %37 = vector.shape_cast %36 : vector<8xf32> to vector<8x1xf32>
    %38 = vector.broadcast %37 : vector<8x1xf32> to vector<8x12xf32>
    %39 = arith.subf %35, %38 : vector<8x12xf32>
    %40 = math.exp %39 : vector<8x12xf32>
    %cst_24 = arith.constant dense<0.000000e+00> : vector<8xf32>
    %41 = vector.multi_reduction <add>, %40, %cst_24 [1] : vector<8x12xf32> to vector<8xf32>
    %42 = vector.shape_cast %41 : vector<8xf32> to vector<8x1xf32>
    %43 = tpu.reciprocal %42 {approx = true} : vector<8x1xf32> -> vector<8x1xf32>
    %44 = vector.broadcast %43 : vector<8x1xf32> to vector<8x12xf32>
    %45 = arith.mulf %40, %44 : vector<8x12xf32>
    %cst_25 = arith.constant dense<0.000000e+00> : vector<8x8xf32>
    %46 = tpu.matmul %45, %34, %cst_25 {dimension_numbers = #tpu.dot_dimension_numbers<[1], [0], [0], [1], [0, 0, 1, 1], [], []>} : vector<8x12xf32>, vector<12x8xf32>, vector<8x8xf32> -> vector<8x8xf32>
    %47 = vector.extract_strided_slice %8 {offsets = [0, 16], sizes = [8, 8], strides = [1, 1]} : vector<8x32xf32> to vector<8x8xf32>
    %48 = vector.extract_strided_slice %12 {offsets = [0, 16], sizes = [12, 8], strides = [1, 1]} : vector<12x32xf32> to vector<12x8xf32>
    %49 = vector.extract_strided_slice %16 {offsets = [0, 16], sizes = [12, 8], strides = [1, 1]} : vector<12x32xf32> to vector<12x8xf32>
    %cst_26 = arith.constant dense<0.000000e+00> : vector<8x12xf32>
    %50 = tpu.matmul %47, %48, %cst_26 {dimension_numbers = #tpu.dot_dimension_numbers<[1], [1], [0], [0], [0, 0, 1, 0], [], []>} : vector<8x8xf32>, vector<12x8xf32>, vector<8x12xf32> -> vector<8x12xf32>
    %cst_27 = arith.constant dense<0xFF800000> : vector<8xf32>
    %51 = vector.multi_reduction <maximumf>, %50, %cst_27 [1] : vector<8x12xf32> to vector<8xf32>
    %52 = vector.shape_cast %51 : vector<8xf32> to vector<8x1xf32>
    %53 = vector.broadcast %52 : vector<8x1xf32> to vector<8x12xf32>
    %54 = arith.subf %50, %53 : vector<8x12xf32>
    %55 = math.exp %54 : vector<8x12xf32>
    %cst_28 = arith.constant dense<0.000000e+00> : vector<8xf32>
    %56 = vector.multi_reduction <add>, %55, %cst_28 [1] : vector<8x12xf32> to vector<8xf32>
    %57 = vector.shape_cast %56 : vector<8xf32> to vector<8x1xf32>
    %58 = tpu.reciprocal %57 {approx = true} : vector<8x1xf32> -> vector<8x1xf32>
    %59 = vector.broadcast %58 : vector<8x1xf32> to vector<8x12xf32>
    %60 = arith.mulf %55, %59 : vector<8x12xf32>
    %cst_29 = arith.constant dense<0.000000e+00> : vector<8x8xf32>
    %61 = tpu.matmul %60, %49, %cst_29 {dimension_numbers = #tpu.dot_dimension_numbers<[1], [0], [0], [1], [0, 0, 1, 1], [], []>} : vector<8x12xf32>, vector<12x8xf32>, vector<8x8xf32> -> vector<8x8xf32>
    %62 = vector.extract_strided_slice %8 {offsets = [0, 24], sizes = [8, 8], strides = [1, 1]} : vector<8x32xf32> to vector<8x8xf32>
    %63 = vector.extract_strided_slice %12 {offsets = [0, 24], sizes = [12, 8], strides = [1, 1]} : vector<12x32xf32> to vector<12x8xf32>
    %64 = vector.extract_strided_slice %16 {offsets = [0, 24], sizes = [12, 8], strides = [1, 1]} : vector<12x32xf32> to vector<12x8xf32>
    %cst_30 = arith.constant dense<0.000000e+00> : vector<8x12xf32>
    %65 = tpu.matmul %62, %63, %cst_30 {dimension_numbers = #tpu.dot_dimension_numbers<[1], [1], [0], [0], [0, 0, 1, 0], [], []>} : vector<8x8xf32>, vector<12x8xf32>, vector<8x12xf32> -> vector<8x12xf32>
    %cst_31 = arith.constant dense<0xFF800000> : vector<8xf32>
    %66 = vector.multi_reduction <maximumf>, %65, %cst_31 [1] : vector<8x12xf32> to vector<8xf32>
    %67 = vector.shape_cast %66 : vector<8xf32> to vector<8x1xf32>
    %68 = vector.broadcast %67 : vector<8x1xf32> to vector<8x12xf32>
    %69 = arith.subf %65, %68 : vector<8x12xf32>
    %70 = math.exp %69 : vector<8x12xf32>
    %cst_32 = arith.constant dense<0.000000e+00> : vector<8xf32>
    %71 = vector.multi_reduction <add>, %70, %cst_32 [1] : vector<8x12xf32> to vector<8xf32>
    %72 = vector.shape_cast %71 : vector<8xf32> to vector<8x1xf32>
    %73 = tpu.reciprocal %72 {approx = true} : vector<8x1xf32> -> vector<8x1xf32>
    %74 = vector.broadcast %73 : vector<8x1xf32> to vector<8x12xf32>
    %75 = arith.mulf %70, %74 : vector<8x12xf32>
    %cst_33 = arith.constant dense<0.000000e+00> : vector<8x8xf32>
    %76 = tpu.matmul %75, %64, %cst_33 {dimension_numbers = #tpu.dot_dimension_numbers<[1], [0], [0], [1], [0, 0, 1, 1], [], []>} : vector<8x12xf32>, vector<12x8xf32>, vector<8x8xf32> -> vector<8x8xf32>
    %77 = tpu.concatenate %31, %46, %61, %76 in 1 : vector<8x8xf32>, vector<8x8xf32>, vector<8x8xf32>, vector<8x8xf32> -> vector<8x32xf32>
    %c0_34 = arith.constant 0 : index
    %c0_35 = arith.constant 0 : index
    %78 = vector.load %arg12[%c0_34, %c0_35] : memref<8x32xf32, #tpu.memory_space<vmem>>, vector<8x32xf32>
    %c0_36 = arith.constant 0 : index
    %c0_37 = arith.constant 0 : index
    %79 = vector.load %arg9[%c0_36, %c0_37] : memref<32x32xf32, #tpu.memory_space<vmem>>, vector<32x32xf32>
    %cst_38 = arith.constant dense<0.000000e+00> : vector<8x32xf32>
    %80 = tpu.matmul %77, %79, %cst_38 {dimension_numbers = #tpu.dot_dimension_numbers<[1], [1], [0], [0], [0, 0, 1, 0], [], []>} : vector<8x32xf32>, vector<32x32xf32>, vector<8x32xf32> -> vector<8x32xf32>
    %81 = arith.addf %78, %80 : vector<8x32xf32>
    %c0_39 = arith.constant 0 : index
    %c0_40 = arith.constant 0 : index
    %82 = vector.load %arg12[%c0_39, %c0_40] : memref<8x32xf32, #tpu.memory_space<vmem>>, vector<8x32xf32>
    tpu.vector_store %arg12[%c0_39, %c0_40], %81 {strides = array<i32>} : memref<8x32xf32, #tpu.memory_space<vmem>>, vector<8x32xf32>,
    %c0_i32_41 = arith.constant 0 : i32
    %83 = arith.cmpi eq, %arg2, %c0_i32_41 : i32
    %84 = arith.extui %83 : i1 to i32
    %c0_i32_42 = arith.constant 0 : i32
    %85 = arith.cmpi ne, %84, %c0_i32_42 : i32
    scf.if %85 {
      %c0_43 = arith.constant 0 : index
      %c0_44 = arith.constant 0 : index
      %86 = vector.load %arg12[%c0_43, %c0_44] : memref<8x32xf32, #tpu.memory_space<vmem>>, vector<8x32xf32>
      %c0_45 = arith.constant 0 : index
      %c0_46 = arith.constant 0 : index
      %87 = vector.load %arg10[%c0_45, %c0_46] : memref<1x32xf32, #tpu.memory_space<vmem>>, vector<1x32xf32>
      %88 = vector.broadcast %87 : vector<1x32xf32> to vector<8x32xf32>
      %89 = arith.addf %86, %88 : vector<8x32xf32>
      %c0_47 = arith.constant 0 : index
      %c0_48 = arith.constant 0 : index
      %c0_49 = arith.constant 0 : index
      %90 = vector.load %arg11[%c0_47, %c0_48, %c0_49] : memref<1x8x32xf32, #tpu.memory_space<vmem>>, vector<1x8x32xf32>
      %91 = vector.shape_cast %90 : vector<1x8x32xf32> to vector<8x32xf32>
      %92 = vector.shape_cast %89 : vector<8x32xf32> to vector<1x8x32xf32>
      tpu.vector_store %arg11[%c0_47, %c0_48, %c0_49], %92 {strides = array<i32>} : memref<1x8x32xf32, #tpu.memory_space<vmem>>, vector<1x8x32xf32>,
    } else {
    }
    return
  }
  func.func @transform_0(%arg0: i32, %arg1: i32, %arg2: i32) -> (i32, i32, i32) {
    %c0_i32 = arith.constant 0 : i32
    %c0_i32_0 = arith.constant 0 : i32
    return %arg0, %arg1, %c0_i32 : i32, i32, i32
  }
  func.func @transform_1(%arg0: i32, %arg1: i32, %arg2: i32) -> (i32, i32, i32) {
    %c0_i32 = arith.constant 0 : i32
    %c0_i32_0 = arith.constant 0 : i32
    %c0_i32_1 = arith.constant 0 : i32
    return %arg0, %c0_i32, %c0_i32_0 : i32, i32, i32
  }
  func.func @transform_2(%arg0: i32, %arg1: i32, %arg2: i32) -> (i32, i32, i32) {
    %c0_i32 = arith.constant 0 : i32
    %c0_i32_0 = arith.constant 0 : i32
    %c0_i32_1 = arith.constant 0 : i32
    return %arg0, %c0_i32, %c0_i32_0 : i32, i32, i32
  }
  func.func @transform_3(%arg0: i32, %arg1: i32, %arg2: i32) -> (i32, i32) {
    %c0_i32 = arith.constant 0 : i32
    %c0_i32_0 = arith.constant 0 : i32
    return %arg2, %c0_i32 : i32, i32
  }
  func.func @transform_4(%arg0: i32, %arg1: i32, %arg2: i32) -> (i32, i32) {
    %c0_i32 = arith.constant 0 : i32
    %c0_i32_0 = arith.constant 0 : i32
    return %arg2, %c0_i32 : i32, i32
  }
  func.func @transform_5(%arg0: i32, %arg1: i32, %arg2: i32) -> (i32, i32) {
    %c0_i32 = arith.constant 0 : i32
    %c0_i32_0 = arith.constant 0 : i32
    return %arg2, %c0_i32 : i32, i32
  }
  func.func @transform_6(%arg0: i32, %arg1: i32, %arg2: i32) -> (i32, i32) {
    %c0_i32 = arith.constant 0 : i32
    %c0_i32_0 = arith.constant 0 : i32
    return %c0_i32, %arg2 : i32, i32
  }
  func.func @transform_7(%arg0: i32, %arg1: i32, %arg2: i32) -> (i32, i32) {
    %c0_i32 = arith.constant 0 : i32
    %c0_i32_0 = arith.constant 0 : i32
    %c0_i32_1 = arith.constant 0 : i32
    return %c0_i32, %c0_i32_0 : i32, i32
  }
  func.func @transform_8(%arg0: i32, %arg1: i32, %arg2: i32) -> (i32, i32, i32) {
    %c0_i32 = arith.constant 0 : i32
    %c0_i32_0 = arith.constant 0 : i32
    return %arg0, %arg1, %c0_i32 : i32, i32, i32
  }
}

</mosaic_0001>

<bundles_post_ra>
// kernel: tpu_custom_call.1
= control target key start
LH: loop header
LB: loop body
LE: loop exit
PB: predicated region body
PF: predicated region fallthrough
CT: control target
= control target key end

     0   :  { %s1684_s0 = inlined_call_operand.vmem [shape: f32[2,8,32], index: 0, kind: input, shape index: {}]   ;;  %s1685_s1 = inlined_call_operand.vmem [shape: f32[2,12,32], index: 1, kind: input, shape index: {}]   ;;  %s1686_s2 = inlined_call_operand.vmem [shape: f32[2,12,32], index: 2, kind: input, shape index: {}]   ;;  %s1687_s3 = inlined_call_operand.vmem [shape: f32[32,32], index: 3, kind: input, shape index: {}]   ;;  %s1688_s4 = inlined_call_operand.vmem [shape: f32[32,32], index: 4, kind: input, shape index: {}]   ;;  %s1689_s5 = inlined_call_operand.vmem [shape: f32[32,32], index: 5, kind: input, shape index: {}]   ;;  %s1690_s6 = inlined_call_operand.hbm [shape: f32[32,32], index: 6, kind: input, shape index: {}]   ;;  %s1691_s7 = inlined_call_operand.vmem [shape: f32[1,32], index: 7, kind: input, shape index: {}]   ;;  %s1692_s8 = inlined_call_operand.hbm [shape: f32[2,8,32], index: 8, kind: output, shape index: {}]  }
   0x1   :  { %1693 = sst [smem:[#allocation9_spill]] %s1690_s6 }
   0x2   :  { %13 = vsyncpa [#allocation4], 0 }
   0x3   :  { %14 = vsyncpa [#allocation5], 0 }
   0x4   :  { %16 = vsyncpa [#allocation5 + $0x1], 0  ;;  %s1462_s27 = smov 0   ;;  %s1464_s28 = smov 0  }
   0x5   :  { %s1466_s29 = smov 0   ;;  %s1468_s30 = smov 0  }
   0x6   :  { %s1470_s9 = smov 0   ;;  %s1472_s10 = smov 0  }
   0x7 LB: > { %s1137_s11 = sadd.s32 4294967295, %s1405_s10   ;;  %s1138_s12 = sadd.s32 4294967294, %s1405_s10   ;;  %s1405_s10 = sphi %s1472_s10, %s22_s10   ;;  %s1401_s9 = sphi %s1470_s9, %s1701_s9   ;;  %s1397_s30 = sphi %s1468_s30, %s1700_s30   ;;  %s1393_s29 = sphi %s1466_s29, %s1699_s29   ;;  %s1389_s28 = sphi %s1464_s28, %s1698_s28   ;;  %s1385_s27 = sphi %s1462_s27, %s1697_s27  }
   0x8   : > { %s41_s13 = sadd.s32 1, %s1401_s9  ;;  %s255_s14 = sadd.s32 1, %s1393_s29 }
   0x9   : > { %p43_p0 = scmp.ge.s32.totalorder %s41_s13, 2  ;;  %p265_p1 = scmp.ne.s32.totalorder %s1393_s29, %s1389_s28 }
   0xa   : > { %p266_p2 = scmp.eq.s32.totalorder %s1137_s11, 1  ;;  %p271_p3 = scmp.ne.s32.totalorder %s1389_s28, %s1385_s27 }
   0xb   : > { %s1703_s13 = smov (%p43_p0, %s41_s13), 0  ;;  %p272_p5 = scmp.eq.s32.totalorder %s1138_s12, 1 }
   0xc   : > { %p1502_p4 = por %p266_p2, %p265_p1  ;;  %s250_s16 = ssub.s32 %s1401_s9, %s1703_s13 }
   0xd   : > { %p1139_p6 = scmp.ge.s32.totalorder %s1405_s10, 1  ;;  %p253_p7 = scmp.eq.s32.totalorder %s250_s16, 0 }
   0xe   : > { %p1509_p8 = por %p272_p5, %p271_p3  ;;  %p279_p9 = scmp.lt.s32.totalorder %s1405_s10, 3 }
   0xf   : > { %s1515_s18 = scalar_select %p253_p7, %s1393_s29, %s255_s14  }
  0x10   : > { %p280_p10 = pnand %p1139_p6, %p279_p9  ;;  %p1215_p11 = scmp.eq.s32.totalorder %s1137_s11, 0 }
  0x11   : > { %s1696_s6 = sld [smem:[#allocation9_spill]]  ;;  %s1407_s22 = smov [#allocation3]  }
  0x12   : > { %p1207_p12 = pneg %p280_p10  ;;  %s321_s23 = sshll.u32 %s1407_s22, 4  ;;  %s322_s23 = int_to_ptr.vmem [resolvable:$true] %s321_s23 }
  0x13   : > { %s1408_s24 = smov 128   ;;  %s1409_s25 = smov 8  }
  0x14   : > { %p1208_p13 = pnand %p1215_p11, %p1207_p12  ;;  %366 = sbr.rel (%p280_p10) target bundleno = 1087 (0x43f), region = 52 }
  0x17   : > { %s319_s21 = sshll.u32 %s1696_s6, 4  ;;  %s320_s21 = int_to_ptr.hbm [resolvable:$true] %s319_s21 }
  0x18   : > { %1210 = dma.hbm_to_vmem [thread:$0]  (!%p1208_p13), %s320_s21, 512, %s322_s23, [#allocation4], %s1408_s24, %s1408_s24, %s1409_s25  }
  0x19   : > { %1376 = dma.done.wait (%p1215_p11), [#allocation4], 512  }
  0x1a   : > { %1378 = vsyncadd (%p1215_p11), [#allocation4], 4294966784  ;;  %vm467_vm0 = vcmask 261120   ;;  %p428_p0 = scmp.lt.s32.totalorder %s1397_s30, 1  ;;  %v516_v0 = vld [vmem:[%s1688_s4 + $0x18] sm:$0xff]  ;;  %v515_v2 = vld [vmem:[%s1688_s4 + $0x10] sm:$0xff] }
  0x1b   : > { %1158 = vmatpush.xpose.msk.msra.mxu1 %vm467_vm0, %v516_v0  ;;  %v473_v1 = vld [vmem:[%s1687_s3 + $0x18] sm:$0xff]  ;;  %v472_v3 = vld [vmem:[%s1687_s3 + $0x10] sm:$0xff]  ;;  %v514_v4 = vld [vmem:[%s1688_s4 + $0x8] sm:$0xff]  ;;  %vm605_vm1 = vcmask 64512   ;;  %s1411_s26 = smov 104   ;;  %s1412_s11 = smov 112  }
  0x1c   : > { %1153 = vmatpush.xpose.msk.msra.mxu0 %vm467_vm0, %v473_v1  ;;  %s1533_s20 = scalar_select %p428_p0, %s1397_s30, 1  ;;  %v471_v5 = vld [vmem:[%s1687_s3 + $0x8] sm:$0xff]  ;;  %v513_v6 = vld [vmem:[%s1688_s4] sm:$0xff]  ;;  %v563_v11 = vld [vmem:[%s1689_s5 + $0x18] sm:$0xff]  ;;  %vm635_vm2 = vcmask 97280   ;;  %vm650_vm3 = vcmask 1043456  }
  0x1d   : > { %v470_v7 = vld [vmem:[%s1687_s3] sm:$0xff]  ;;  %1164 = vmatpush.xpose.msk.msra.mxu2 %vm467_vm0, %v563_v11  ;;  %v562_v12 = vld [vmem:[%s1689_s5 + $0x10] sm:$0xff]  ;;  %v561_v14 = vld [vmem:[%s1689_s5 + $0x8] sm:$0xff]  ;;  %s1415_s19 = smov 24   ;;  %vm907_vm4 = vcmask 130048   ;;  %vm909_vm5 = vcmask 195584  }
  0x1e   : > { %s1199_s25 = sshll.u32 %s1533_s20, 4  ;;  %s1148_s12 = sshll.u32 %s1533_s20, 3  ;;  %v560_v17 = vld [vmem:[%s1689_s5] sm:$0xff] }
  0x1f   : > { %1159 = vmatpush.xpose.msk.msra.mxu1 %vm467_vm0, %v515_v2  ;;  %s439_s22 = scalar_lea.vmem %s1685_s1, %s1199_s25  ;;  %s434_s6 = scalar_lea.vmem %s1684_s0, %s1148_s12 }
  0x20   : > { %1154 = vmatpush.xpose.msk.msra.mxu0 %vm467_vm0, %v472_v3  ;;  %v511_v8 = vld [vmem:[%s439_s22] sm:$0xff]  ;;  %v512_v10 = vld [vmem:[%s439_s22 + $0x8] sm:$0xf]  ;;  %s1410_s22 = smov 120   ;;  %s444_s12 = scalar_lea.vmem %s1686_s2, %s1199_s25 }
  0x21   : > { %v469_v9 = vld [vmem:[%s434_s6] sm:$0xff]  ;;  %1165 = vmatpush.xpose.msk.msra.mxu2 %vm467_vm0, %v562_v12  ;;  %v559_v20 = vld [vmem:[%s444_s12 + $0x8] sm:$0xf]  ;;  %s1413_s20 = smov 8   ;;  %s1414_s25 = smov 16  }
  0x22   : > { %v558_v19 = vld [vmem:[%s444_s12] sm:$0xff]  ;;  %s425_s6 = sand.u32 1, %s1389_s28  }
  0x23   : > { %1160 = vmatpush.xpose.msk.msra.mxu1 %vm467_vm0, %v514_v4  ;;  %s1147_s21 = sshll.u32 %s425_s6, 3 }
  0x24   : > { %1155 = vmatpush.xpose.msk.msra.mxu0 %vm467_vm0, %v471_v5  ;;  %s427_s16 = scalar_lea.vmem [#allocation6], %s1147_s21  ;;  %s1343_s21 = scalar_lea.hbm %s1692_s8, 16 }
  0x25   : > { %1166 = vmatpush.xpose.msk.msra.mxu2 %vm467_vm0, %v561_v14  ;;  %s977_s12 = sshll.u32 %s427_s16, 4  ;;  %s978_s12 = int_to_ptr.vmem [resolvable:$true] %s977_s12 }
  0x27   : > { %1161 = vmatpush.xpose.msk.msra.mxu1 %vm467_vm0, %v513_v6 }
  0x28   : > { %1156 = vmatpush.xpose.msk.msra.mxu0 %vm467_vm0, %v470_v7 }
  0x29   : > { %1167 = vmatpush.xpose.msk.msra.mxu2 %vm467_vm0, %v560_v17 }
  0x2a   : > { %1162 = vmatmul.msk.f32.vlgmr.msra.gmra.mxu1 %vm467_vm0, %v511_v8 }
  0x2b   : > { %1157 = vmatmul.msk.f32.vlgmr.msra.gmra.mxu0 %vm467_vm0, %v469_v9 }
  0x2c   : > { %1168 = vmatmul.msk.f32.vlgmr.msra.gmra.mxu2 %vm467_vm0, %v558_v19  ;;  %v914_v19 = vld [vmem:[#allocation3 + $0x10] sm:$0xff] }
  0x32   : > { %1163 = vmatmul.msk.f32.gmra.mxu1 %vm467_vm0, %v512_v10 }
  0x34   : > { %1169 = vmatmul.msk.f32.gmra.mxu2 %vm467_vm0, %v559_v20  ;;  %v913_v20 = vld [vmem:[#allocation3 + $0x8] sm:$0xff] }
  0xa7   : > { %v552_v13 = vpop.f32.mrf.mxu1 }
  0xa8   : > { %676 = vrot.lane.b32.xlu1 %v552_v13, %s1410_s22  ;;  %v507_v15 = vpop.f32.mrf.mxu0 }
  0xa9   : > { %v510_v16 = vmul.f32 0.35355338, %v507_v15 }
  0xab   : > { %674 = vrot.lane.b32.xlu2 %v510_v16, %s1410_s22 }
  0xaf   : > { %v555_v18 = vpop.f32.mrf.mxu1  ;;  %v599_v32 = vpop.f32.mrf.mxu2 }
  0xb0   : > { %823 = vrot.lane.b32.xlu1 %v552_v13, %s1411_s26  ;;  %678 = vrot.lane.b32.xlu0 %v555_v18, %s1410_s22 }
  0xb1   : > { %1170 = vmatpush.xpose.msk.msra.mxu3 %vm605_vm1, %v555_v18 }
  0xb3   : > { %821 = vrot.lane.b32.xlu2 %v510_v16, %s1411_s26 }
  0xb5   : > { %1171 = vmatpush.xpose.msk.msra.mxu3 %vm605_vm1, %v552_v13 }
  0xb7   : > { %v602_v33 = vpop.f32.mrf.mxu2 }
  0xb8   : > { %1172 = vmatmul.msk.f32.vlgmr.msra.gmra.mxu3 %vm605_vm1, %v510_v16  ;;  %750 = vrot.lane.b32.xlu1 %v552_v13, %s1412_s11 }
  0xb9   : > { %825 = vrot.lane.b32.xlu0 %v555_v18, %s1411_s26  ;;  %1173 = vmatpush.msk.msrb.mxu3 %vm650_vm3, %v602_v33 }
  0xbb   : > { %748 = vrot.lane.b32.xlu2 %v510_v16, %s1412_s11  ;;  %669 = vmatpush.msrb.mxu3 %v599_v32 }
  0xc1   : > { %752 = vrot.lane.b32.xlu0 %v555_v18, %s1412_s11  ;;  %v915_v18 = vld [vmem:[#allocation3 + $0x18] sm:$0xff] }
 0x105   : > { %v675_v23 = vpop.permute.xlu2 %674 }
 0x10d   : > { %v822_v26 = vpop.permute.xlu2 %821 }
 0x115   : > { %v749_v29 = vpop.permute.xlu2 %748 }
 0x11a   : > { %v677_v22 = vpop.permute.xlu1 %676 }
 0x122   : > { %v679_v21 = vpop.permute.xlu0 %678  ;;  %v824_v25 = vpop.permute.xlu1 %823 }
 0x123   : > { %1175 = vmatpush.xpose.msk.msrb.mxu1 %vm605_vm1, %v679_v21  ;;  %v912_v21 = vld [vmem:[#allocation3] sm:$0xff] }
 0x127   : > { %1176 = vmatpush.xpose.msk.msrb.mxu1 %vm605_vm1, %v677_v22  ;;  %v1416_v22 = vmov 0.0  }
 0x128   : > { %468 = vst.msk [vmem:[#allocation2] sm:$0xff] %vm467_vm0, %v1416_v22 }
 0x12a   : > { %1177 = vmatmul.msk.f32.vlgmr.msrb.gmra.mxu1 %vm605_vm1, %v675_v23  ;;  %v751_v28 = vpop.permute.xlu1 %750 }
 0x12b   : > { %v826_v24 = vpop.permute.xlu0 %825 }
 0x12c   : > { %1185 = vmatpush.xpose.msk.msrb.mxu2 %vm605_vm1, %v826_v24 }
 0x130   : > { %1186 = vmatpush.xpose.msk.msrb.mxu2 %vm605_vm1, %v824_v25 }
 0x133   : > { %v753_v27 = vpop.permute.xlu0 %752  ;;  %1187 = vmatmul.msk.f32.vlgmr.msrb.gmra.mxu2 %vm605_vm1, %v822_v26 }
 0x134   : > { %1180 = vmatpush.xpose.msk.msrb.mxu0 %vm605_vm1, %v753_v27 }
 0x138   : > { %1181 = vmatpush.xpose.msk.msrb.mxu0 %vm605_vm1, %v751_v28 }
 0x13b   : > { %v632_v30 = vpop.f32.mrf.mxu3  ;;  %1182 = vmatmul.msk.f32.vlgmr.msrb.gmra.mxu0 %vm605_vm1, %v749_v29  ;;  %v911_v29 = vld [vmem:[#allocation2] sm:$0xff] }
 0x13c   : > { %v636_v31 = vsel %vm635_vm2, %v632_v30, -inf  ;;  %1190 = vmatpush.xpose.msk.msra.mxu0 %vm467_vm0, %v915_v18 }
 0x13d   : > { %637 = vmax.xlane.f32.xlu0 %v636_v31 }
 0x140   : > { %1191 = vmatpush.xpose.msk.msra.mxu0 %vm467_vm0, %v914_v19 }
 0x144   : > { %1192 = vmatpush.xpose.msk.msra.mxu0 %vm467_vm0, %v913_v20 }
 0x148   : > { %1193 = vmatpush.xpose.msk.msra.mxu0 %vm467_vm0, %v912_v21 }
 0x1a7   : > { %v703_v34 = vpop.f32.mrf.mxu1 }
 0x1a8   : > { %v706_v35 = vsel %vm635_vm2, %v703_v34, -inf }
 0x1a9   : > { %707 = vmax.xlane.f32.xlu1 %v706_v35 }
 0x1b0   : > { %v638_v36 = vpop.xlane.xlu0 %637 }
 0x1b1   : > { %v639_v37 = vsub.f32 %v632_v30, %v638_v36 }
 0x1b3   : > { %v640_v38 = vmul.f32 1.442695, %v639_v37 }
 0x1b5   : > { %1277 = vpow2.f32 %v640_v38 }
 0x1b6   : > { %v850_v39 = vpop.f32.mrf.mxu2 }
 0x1b7   : > { %v853_v40 = vsel %vm635_vm2, %v850_v39, -inf }
 0x1b8   : > { %854 = vmax.xlane.f32.xlu2 %v853_v40  ;;  %v777_v42 = vpop.f32.mrf.mxu0 }
 0x1b9   : > { %v780_v44 = vsel %vm635_vm2, %v777_v42, -inf }
 0x1bb   : > { %v1278_v41 = vpop.eup %1277 }
 0x1bc   : > { %v642_v43 = vsel %vm635_vm2, %v1278_v41, 0.0 }
 0x1bd   : > { %643 = vadd.xlane.f32.xlu0 %v642_v43 }
 0x1c0   : > { %781 = vmax.xlane.f32.xlu2 %v780_v44 }
 0x1c2   : > { %718 = vrot.lane.b32.xlu1 %v599_v32, %s1410_s22 }
 0x1d8   : > { %720 = vrot.lane.b32.xlu2 %v602_v33, %s1410_s22  ;;  %s1196_s22 = sshll.u32 %s1397_s30, 3  ;;  %s964_s30 = scalar_lea.sflag [#allocation5], %s425_s6 }
 0x1e0   : > { %864 = vrot.lane.b32.xlu2 %v599_v32, %s1411_s26 }
 0x1e8   : > { %791 = vrot.lane.b32.xlu2 %v599_v32, %s1412_s11  ;;  %v1276_v32 = vld [vmem:[%s1691_s7] ss:$0 sm:$0xff] }
 0x21c   : > { %v708_v45 = vpop.xlane.xlu1 %707 }
 0x21d   : > { %v709_v46 = vsub.f32 %v703_v34, %v708_v45 }
 0x21f   : > { %v710_v47 = vmul.f32 1.442695, %v709_v46 }
 0x221   : > { %1279 = vpow2.f32 %v710_v47 }
 0x227   : > { %v1280_v48 = vpop.eup %1279 }
 0x228   : > { %v712_v49 = vsel %vm635_vm2, %v1280_v48, 0.0 }
 0x229   : > { %713 = vadd.xlane.f32.xlu1 %v712_v49 }
 0x22b   : > { %v855_v50 = vpop.xlane.xlu2 %854 }
 0x22c   : > { %v856_v54 = vsub.f32 %v850_v39, %v855_v50 }
 0x22e   : > { %v857_v58 = vmul.f32 1.442695, %v856_v54 }
 0x230   : > { %v644_v51 = vpop.xlane.xlu0 %643 }
 0x231   : > { %1281 = vrcp.f32 %v644_v51 }
 0x233   : > { %v782_v52 = vpop.xlane.xlu2 %781 }
 0x234   : > { %v783_v53 = vsub.f32 %v777_v42, %v782_v52  ;;  %v719_v60 = vpop.permute.xlu1 %718 }
 0x236   : > { %v784_v55 = vmul.f32 1.442695, %v783_v53 }
 0x237   : > { %v1282_v56 = vpop.eup %1281 }
 0x238   : > { %1283 = vpow2.f32 %v784_v55  ;;  %v646_v57 = vmul.f32 %v1282_v56, %v1278_v41 }
 0x239   : > { %1285 = vpow2.f32 %v857_v58 }
 0x23a   : > { %1174 = vmatmul.msk.f32.vlgmr.msrb.gmra.mxu3 %vm635_vm2, %v646_v57 }
 0x23b   : > { %v721_v59 = vpop.permute.xlu2 %720 }
 0x23c   : > { %1178 = vmatpush.msk.msra.mxu3 %vm650_vm3, %v721_v59 }
 0x23e   : > { %v1284_v61 = vpop.eup %1283  ;;  %743 = vmatpush.msra.mxu3 %v719_v60 }
 0x23f   : > { %v786_v62 = vsel %vm635_vm2, %v1284_v61, 0.0  ;;  %v1286_v63 = vpop.eup %1285 }
 0x240   : > { %787 = vadd.xlane.f32.xlu0 %v786_v62  ;;  %v859_v0 = vsel %vm635_vm2, %v1286_v63, 0.0 }
 0x242   : > { %793 = vrot.lane.b32.xlu1 %v602_v33, %s1412_s11 }
 0x243   : > { %v865_v4 = vpop.permute.xlu2 %864 }
 0x248   : > { %860 = vadd.xlane.f32.xlu0 %v859_v0 }
 0x24b   : > { %v792_v7 = vpop.permute.xlu2 %791 }
 0x25c   : > { %866 = vrot.lane.b32.xlu0 %v602_v33, %s1411_s26  ;;  %s975_s26 = scalar_lea.hbm %s1692_s8, %s1196_s22 }
 0x29c   : > { %v714_v1 = vpop.xlane.xlu1 %713 }
 0x29d   : > { %1287 = vrcp.f32 %v714_v1 }
 0x2a3   : > { %v1288_v2 = vpop.eup %1287 }
 0x2a4   : > { %v716_v3 = vmul.f32 %v1288_v2, %v1280_v48 }
 0x2a6   : > { %1179 = vmatmul.msk.f32.vlgmr.msra.gmra.mxu3 %vm635_vm2, %v716_v3 }
 0x2b3   : > { %v788_v5 = vpop.xlane.xlu0 %787 }
 0x2b4   : > { %1289 = vrcp.f32 %v788_v5  ;;  %v794_v6 = vpop.permute.xlu1 %793 }
 0x2b5   : > { %1183 = vmatpush.msk.msra.mxu1 %vm650_vm3, %v794_v6 }
 0x2b7   : > { %816 = vmatpush.msra.mxu1 %v792_v7 }
 0x2ba   : > { %v1290_v8 = vpop.eup %1289 }
 0x2bb   : > { %v790_v9 = vmul.f32 %v1290_v8, %v1284_v61  ;;  %v861_v10 = vpop.xlane.xlu0 %860 }
 0x2bc   : > { %1291 = vrcp.f32 %v861_v10 }
 0x2bd   : > { %1184 = vmatmul.msk.f32.vlgmr.msra.gmra.mxu1 %vm635_vm2, %v790_v9  ;;  %v671_v14 = vpop.f32.mrf.mxu3 }
 0x2c2   : > { %v1292_v11 = vpop.eup %1291 }
 0x2c3   : > { %v863_v13 = vmul.f32 %v1292_v11, %v1286_v63 }
 0x2ce   : > { %v867_v12 = vpop.permute.xlu0 %866 }
 0x2cf   : > { %1188 = vmatpush.msk.msrb.mxu3 %vm650_vm3, %v867_v12 }
 0x2d1   : > { %889 = vmatpush.msrb.mxu3 %v865_v4 }
 0x2d2   : > { %1189 = vmatmul.msk.f32.vlgmr.msrb.gmra.mxu3 %vm635_vm2, %v863_v13 }
 0x329   : > { %v745_v15 = vpop.f32.mrf.mxu3 }
 0x32a   : > { %895 = vrot.lane.b32.xlu1 %v745_v15, %s1413_s20  ;;  %s979_s20 = sshll.u32 %s975_s26, 4  ;;  %s980_s20 = int_to_ptr.hbm [resolvable:$true] %s979_s20 }
 0x33a   : > { %v818_v16 = vpop.f32.mrf.mxu1 }
 0x33b   : > { %899 = vrot.lane.b32.xlu0 %v818_v16, %s1414_s25  ;;  %s1337_s25 = sshra.s32 %s980_s20, 4  ;;  %s1338_s25 = int_to_ptr.hbm [resolvable:$true] %s1337_s25 }
 0x33c   : > { %p1344_p5 = scmp.lt.s32.totalorder %s1338_s25, %s1692_s8 }
 0x355   : > { %v891_v17 = vpop.f32.mrf.mxu3 }
 0x356   : > { %903 = vrot.lane.b32.xlu2 %v891_v17, %s1415_s19  ;;  %s1339_s19 = scalar_lea.hbm %s1338_s25, 8 }
 0x357   : > { %p1340_p1 = scmp.ne.s32.totalorder %s1338_s25, %s1339_s19  ;;  %p1345_p6 = scmp.lt.s32.totalorder %s1343_s21, %s1339_s19 }
 0x359   : > { %p1341_p2 = pnand %p1340_p1, %p1502_p4  ;;  %p1346_p7 = por %p1345_p6, %p1344_p5 }
 0x35b   : > { %p1342_p3 = pneg %p1341_p2 }
 0x35d   : > { %p1347_p9 = pnand %p1346_p7, %p1342_p3 }
 0x39c   : > { %v896_v23 = vpop.permute.xlu1 %895 }
 0x39d   : > { %v906_v25 = vsel %vm605_vm1, %v671_v14, %v896_v23 }
 0x3ad   : > { %v900_v24 = vpop.permute.xlu0 %899 }
 0x3ae   : > { %v908_v26 = vsel %vm907_vm4, %v906_v25, %v900_v24 }
 0x3b0   : > { %v904_v27 = vpop.permute.xlu2 %903 }
 0x3b1   : > { %v910_v28 = vsel %vm909_vm5, %v908_v26, %v904_v27 }
 0x3b2   : > { %1194 = vmatmul.msk.f32.vlgmr.msra.gmra.mxu0 %vm467_vm0, %v910_v28 }
 0x42f   : > { %v948_v30 = vpop.f32.mrf.mxu0 }
 0x430   : > { %v951_v31 = vadd.f32 %v948_v30, %v911_v29 }
 0x432   : > { %952 = vst.msk [vmem:[#allocation2] sm:$0xff] %vm467_vm0, %v951_v31 }
 0x439   : > { %v956_v33 = vld [vmem:[#allocation2] sm:$0xff] }
 0x43a   : > { %v961_v34 = vadd.f32 %v1276_v32, %v956_v33 }
 0x43c   : > { %962 = vst.msk [vmem:[%s427_s16] sm:$0xff] %vm467_vm0, %v961_v34 }
 0x43d   : > { %1350 = shalt.err (!%p1347_p9)
}
 0x43e   : > { %1205 = dma.vmem_to_hbm [thread:$0]  (%p1502_p4), %s978_s12, 128, %s980_s20, %s964_s30  }
 0x43f PF: > { %p1217_p10 = scmp.ge.s32.totalorder %s1405_s10, 2  ;;  %s991_s6 = sand.u32 1, %s1385_s27  }
 0x440   : > { %s992_s11 = scalar_lea.sflag [#allocation5], %s991_s6 }
 0x441   : > { %p1212_p11 = pnand %p1217_p10, %p1509_p8 }
 0x443   : > { %p1213_p12 = pneg %p1212_p11 }
 0x445   : > { %1380 = dma.done.wait (%p1213_p12), %s992_s11, 128  }
 0x446   : > { %1382 = vsyncadd (%p1213_p12), %s992_s11, 4294967168  ;;  %s22_s10 = sadd.s32 1, %s1405_s10   ;;  %s1697_s27 = smov %s1389_s28 }
 0x447   : > { %p19_p13 = scmp.ge.s32.totalorder %s22_s10, 4   ;;  %s1698_s28 = smov %s1393_s29 }
 0x448   : > { %s1699_s29 = smov %s1515_s18  ;;  %s1700_s30 = smov %s1401_s9 }
 0x449   : > { %s1701_s9 = smov %s1703_s13  ;;  %21 = sbr.rel (!%p19_p13) target bundleno = 7 (0x7), region = 116 }
 0x44e   :  { %998 = vsyncpa [#allocation4], 1 }
 0x44f   :  { %1000 = vsyncpa [#allocation4 + $0x1], 1 }
 0x450   :  { %1001 = vsyncpa [#allocation5], 1 }
 0x451   :  { %1003 = vsyncpa [#allocation5 + $0x1], 1 }

</bundles_post_ra>
